<compile_context>
chip_gen: v7x
topology: tpu7x:2x2x1
jax: 0.10.0
libtpu: 0.0.40
codegen_flags: <defaults>
</compile_context>

<pallas_src>
import numpy as np
import jax
import jax.numpy as jnp
from jax.experimental import pallas as pl
from jax.experimental.pallas import tpu as pltpu


def _round_up(x, m):
    return ((x + m - 1) // m) * m


# ---------------------------------------------------------------------------
# Graph construction (plain numpy glue — matches build_imu_graph semantics)
# ---------------------------------------------------------------------------
def build_imu_graph_edges(sequence_length, num_signals,
                          temporal_back_connections=1,
                          inter_signal_back_connections=False):
    num_vertices = sequence_length * num_signals
    edges = []
    for i in range(0, num_vertices, num_signals):
        for j in range(num_signals):
            for k in range(j + 1, num_signals):
                edges.append((i + j, i + k))
                edges.append((i + k, i + j))
        for j in range(min(i // num_signals, temporal_back_connections)):
            for k in range(num_signals):
                for m in range(num_signals):
                    if k == m or inter_signal_back_connections:
                        edges.append((i - num_signals * (j + 1) + k, i + m))
    return edges, num_vertices


def build_imu_graph_adjacency(sequence_length, num_signals,
                              normalization="column",
                              temporal_back_connections=1,
                              inter_signal_back_connections=False):
    edges, num_vertices = build_imu_graph_edges(
        sequence_length, num_signals,
        temporal_back_connections, inter_signal_back_connections)
    adj = np.zeros((num_vertices, num_vertices), dtype=np.float32)
    for (src, dst) in edges:
        adj[dst, src] = 1.0
    adj += np.eye(num_vertices, dtype=np.float32)   # self-loops
    if normalization == "column":
        col = adj.sum(axis=0, keepdims=True)
        adj = adj / np.maximum(col, 1.0)
    else:  # "row"
        row = adj.sum(axis=1, keepdims=True)
        adj = adj / np.maximum(row, 1.0)
    return adj


# ---------------------------------------------------------------------------
# Fused Pallas kernel: all GCN layers + mean pool + FC head in one launch
# ---------------------------------------------------------------------------
def _make_fused_kernel(num_layers, V, L, NBK, inv_v):
    bf16 = jnp.bfloat16

    def kernel(a_ref, x_ref, w0_ref, b0_ref, *refs):
        # refs = (w_bd_1, b_1, ..., w_bd_{L-1}, b_{L-1}, wfc_bd, bfc, o_ref)
        o_ref = refs[-1]
        wfc_ref, bfc_ref = refs[-3], refs[-2]
        layer_refs = refs[:-3]

        a = a_ref[...]                       # (V, V) bf16, VMEM-resident
        x = x_ref[0]                         # (V, L) f32, batch folded in lanes

        # ---- layer 0 (Cin = 1): projection == VPU broadcast multiply -------
        y = x * w0_ref[...]                                   # no K=1 MXU pass
        agg = jnp.dot(a, y.astype(bf16), preferred_element_type=jnp.float32)
        y = jnp.maximum(agg + b0_ref[...], 0.0)               # (V, L) f32

        # ---- layers 1..num_layers-1: block-diag projection + aggregation ---
        # Layout stays (V, L=NB*C) the whole time -> zero in-kernel reshapes.
        for l in range(num_layers - 1):                       # static unroll
            w = layer_refs[2 * l][...]       # (L, L) bf16 block-diagonal
            b = layer_refs[2 * l + 1][...]   # (1, L) f32 (tiled per sample)
            proj = jnp.dot(y.astype(bf16), w,
                           preferred_element_type=jnp.float32)
            agg = jnp.dot(a, proj.astype(bf16),
                          preferred_element_type=jnp.float32)
            y = jnp.maximum(agg + b, 0.0)

        # ---- head: FC BEFORE pooling (keeps M=V on the MXU), then mean-pool
        # as a leading-axis sum on the XLU.  No M=1 / (1,V) MXU pass and no
        # lane<->sublane relayout; output store is lane-dense (NBK=128). -----
        fc = jnp.dot(y.astype(bf16), wfc_ref[...],
                     preferred_element_type=jnp.float32)      # (V, NBK)
        logits = jnp.sum(fc, axis=0, keepdims=True) * inv_v + bfc_ref[...]
        o_ref[0] = logits                                     # (1, NBK)

    return kernel


def imu_gcn_fused_forward(xg, adj, w0_t, b0_t, layer_params,
                          fc_w_bd, fc_b_t, num_layers):
    """xg: (GB, V, L) lane-folded inputs. Returns (GB, 1, NBK) padded logits."""
    GB, V, L = xg.shape
    NBK = fc_w_bd.shape[1]

    kernel = _make_fused_kernel(num_layers, V, L, NBK, 1.0 / V)

    def const_spec(shape):
        nd = len(shape)
        return pl.BlockSpec(shape, lambda g, _nd=nd: (0,) * _nd)

    in_specs = [const_spec(adj.shape),                               # adjacency
                pl.BlockSpec((1, V, L), lambda g: (g, 0, 0)),        # inputs
                const_spec(w0_t.shape), const_spec(b0_t.shape)]
    args = [adj, xg, w0_t, b0_t]
    for p in layer_params:
        in_specs.append(const_spec(p.shape))
        args.append(p)
    in_specs += [const_spec(fc_w_bd.shape), const_spec(fc_b_t.shape)]
    args += [fc_w_bd, fc_b_t]

    # Advisory cost hint for the XLA scheduler around the fused custom call.
    flops = GB * (2 * V * V * L
                  + (num_layers - 1) * (2 * V * L * L + 2 * V * V * L)
                  + 2 * V * L * NBK)
    bytes_accessed = int(sum(int(a.size) * a.dtype.itemsize for a in args)
                         + GB * NBK * 4)

    return pl.pallas_call(
        kernel,
        out_shape=jax.ShapeDtypeStruct((GB, 1, NBK), jnp.float32),
        grid=(GB,),
        in_specs=in_specs,
        out_specs=pl.BlockSpec((1, 1, NBK), lambda g: (g, 0, 0)),
        compiler_params=pltpu.CompilerParams(
            dimension_semantics=("parallel",),      # shards across v7x TCs
            vmem_limit_bytes=32 * 1024 * 1024),     # explicit (v5e default=16M)
        cost_estimate=pl.CostEstimate(flops=flops, transcendentals=0,
                                      bytes_accessed=bytes_accessed),
    )(*args)


# ---------------------------------------------------------------------------
# ImuGCN wrapper (parameter setup + host-side layout glue)
# ---------------------------------------------------------------------------
class ImuGCNPallas:
    def __init__(self, data_shape, num_classes, key,
                 num_layers=3, inner_feature_dim=32,
                 graph_node_format="node_per_value",
                 adjacency_normalization="column",
                 num_temporal_back_connections=1,
                 inter_signal_back_connections=False):
        sequence_length, num_signals_0 = data_shape
        assert graph_node_format == "node_per_value"
        num_signals = num_signals_0              # node_per_value
        self.num_features = 1
        self.num_nodes = sequence_length * num_signals
        self.num_classes = num_classes
        self.num_layers = num_layers
        self.c = inner_feature_dim

        # Fold batch into lanes so NB * C == 128 (lane-dense without padding
        # the hidden channels).  Falls back to NB=1 if C doesn't divide 128.
        self.nb = 128 // self.c if (self.c <= 128 and 128 % self.c == 0) else 1
        self.l = self.nb * self.c
        kp_unit = 128 // self.nb if 128 % self.nb == 0 else 8
        self.kp = _round_up(num_classes, kp_unit)
        self.nbk = self.nb * self.kp

        adj_np = build_imu_graph_adjacency(
            sequence_length, num_signals, adjacency_normalization,
            num_temporal_back_connections, inter_signal_back_connections)
        self.adj = jnp.asarray(adj_np)                        # f32 (reference)
        self.adj_bf16 = self.adj.astype(jnp.bfloat16)         # kernel operand

        # Deterministic synthetic parameter init (no checkpoint).
        dims = [self.num_features] + [self.c] * num_layers
        self.weights, self.biases = [], []
        for i in range(num_layers):
            key, k_w, k_b = jax.random.split(key, 3)
            cin, cout = dims[i], dims[i + 1]
            w = jax.random.normal(k_w, (cin, cout), jnp.float32) / np.sqrt(cin)
            b = 0.1 * jax.random.normal(k_b, (1, cout), jnp.float32)
            self.weights.append(w)
            self.biases.append(b)
        key, k_fc, k_fb = jax.random.split(key, 3)
        self.fc_w = (jax.random.normal(k_fc, (self.c, num_classes), jnp.float32)
                     / np.sqrt(self.c))
        self.fc_b = 0.1 * jax.random.normal(k_fb, (1, num_classes), jnp.float32)

        # Kernel-layout parameters: weights become (L,L) block-diagonal (one
        # (C,C) block per folded batch sample), biases are lane-tiled.
        eye_nb = jnp.eye(self.nb, dtype=jnp.float32)
        self.w0_t = jnp.tile(self.weights[0], (1, self.nb))           # (1, L) f32
        self.b_t = [jnp.tile(b, (1, self.nb)) for b in self.biases]   # (1, L) f32
        self.layer_params = []
        for i in range(1, num_layers):
            w_bd = jnp.kron(eye_nb, self.weights[i]).astype(jnp.bfloat16)
            self.layer_params += [w_bd, self.b_t[i]]
        fc_w_pad = (jnp.zeros((self.c, self.kp), jnp.float32)
                    .at[:, :num_classes].set(self.fc_w))
        fc_b_pad = (jnp.zeros((1, self.kp), jnp.float32)
                    .at[:, :num_classes].set(self.fc_b))
        self.fc_w_bd = jnp.kron(eye_nb, fc_w_pad).astype(jnp.bfloat16)  # (L, NBK)
        self.fc_b_t = jnp.tile(fc_b_pad, (1, self.nb))                  # (1, NBK)

    def __call__(self, x):
        # PyTorch node_per_value: x.flatten(start_dim=1).unsqueeze(1) -> (N,1,V)
        n = x.shape[0]
        xf = x.reshape(n, self.num_nodes)                   # (N, V) node values

        gb = -(-n // self.nb)                               # batch groups of NB
        n_pad = gb * self.nb
        if n_pad != n:
            xf = jnp.pad(xf, ((0, n_pad - n), (0, 0)))
        # (GB, NB, V) -> (GB, V, NB); repeat each batch column C times so
        # x_exp[g, v, nb*C + c] = x[g*NB + nb, v]   (folded-batch lane layout;
        # host-side layout plumbing only — the w0 multiply stays in-kernel).
        xg = jnp.transpose(xf.reshape(gb, self.nb, self.num_nodes), (0, 2, 1))
        xg = jnp.repeat(xg, self.c, axis=-1)                # (GB, V, L)

        out = imu_gcn_fused_forward(xg, self.adj_bf16, self.w0_t, self.b_t[0],
                                    self.layer_params, self.fc_w_bd,
                                    self.fc_b_t, self.num_layers)
        out = out.reshape(n_pad, self.kp)[:n, :self.num_classes]
        return out

    # Pure-JAX f32 reference (same math, unfolded / unpadded).
    def reference(self, x):
        n = x.shape[0]
        h = x.reshape(n, self.num_nodes, 1)                 # (N, V, 1)
        for w, b in zip(self.weights, self.biases):
            agg = jnp.einsum("uv,nvc->nuc", self.adj, h)
            h = jnp.maximum(agg @ w + b, 0.0)
        pooled = h.mean(axis=1)                             # (N, C)
        return pooled @ self.fc_w + self.fc_b


if __name__ == "__main__":
    # Small shapes: sequence_length=8, num_signals=6 -> V=48 graph nodes.
    N, T, S = 2, 8, 6
    NUM_CLASSES = 10

    key = jax.random.PRNGKey(0)
    key, k_x, k_m = jax.random.split(key, 3)
    x = jax.random.normal(k_x, (N, T, S), jnp.float32)      # 'inertial' input

    model = ImuGCNPallas((T, S), NUM_CLASSES, k_m,
                         num_layers=3, inner_feature_dim=32)

    out = jax.block_until_ready(model(x))
    assert out.shape == (N, NUM_CLASSES)

    with jax.default_matmul_precision("highest"):
        ref = jax.block_until_ready(model.reference(x))
    np.testing.assert_allclose(np.asarray(out), np.asarray(ref),
                               rtol=2e-2, atol=2e-2)
    print("KERNEL_OK")
</pallas_src>

<mosaic_0001>
module attributes {stable_mosaic.version = 11 : i64} {
  func.func @kernel(%arg0: i32, %arg1: memref<48x48xbf16, #tpu.memory_space<vmem>>, %arg2: memref<1x48x128xf32, #tpu.memory_space<vmem>>, %arg3: memref<1x128xf32, #tpu.memory_space<vmem>>, %arg4: memref<1x128xf32, #tpu.memory_space<vmem>>, %arg5: memref<128x128xbf16, #tpu.memory_space<vmem>>, %arg6: memref<1x128xf32, #tpu.memory_space<vmem>>, %arg7: memref<128x128xbf16, #tpu.memory_space<vmem>>, %arg8: memref<1x128xf32, #tpu.memory_space<vmem>>, %arg9: memref<128x128xbf16, #tpu.memory_space<vmem>>, %arg10: memref<1x128xf32, #tpu.memory_space<vmem>>, %arg11: memref<1x1x128xf32, #tpu.memory_space<vmem>>) attributes {dimension_semantics = [#tpu.dimension_semantics<parallel>], iteration_bounds = array<i64: 1>, scalar_prefetch = 0 : i64, scratch_operands = 0 : i64, tpu.core_type = #tpu.core_type<tc>, window_params = [{pipeline_mode = #tpu.pipeline_mode<synchronous>, transform_indices = @transform_0, window_bounds = array<i64: 48, 48>}, {transform_indices = @transform_1, window_bounds = array<i64: 1, 48, 128>}, {pipeline_mode = #tpu.pipeline_mode<synchronous>, transform_indices = @transform_2, window_bounds = array<i64: 1, 128>}, {pipeline_mode = #tpu.pipeline_mode<synchronous>, transform_indices = @transform_3, window_bounds = array<i64: 1, 128>}, {pipeline_mode = #tpu.pipeline_mode<synchronous>, transform_indices = @transform_4, window_bounds = array<i64: 128, 128>}, {pipeline_mode = #tpu.pipeline_mode<synchronous>, transform_indices = @transform_5, window_bounds = array<i64: 1, 128>}, {pipeline_mode = #tpu.pipeline_mode<synchronous>, transform_indices = @transform_6, window_bounds = array<i64: 128, 128>}, {pipeline_mode = #tpu.pipeline_mode<synchronous>, transform_indices = @transform_7, window_bounds = array<i64: 1, 128>}, {pipeline_mode = #tpu.pipeline_mode<synchronous>, transform_indices = @transform_8, window_bounds = array<i64: 128, 128>}, {pipeline_mode = #tpu.pipeline_mode<synchronous>, transform_indices = @transform_9, window_bounds = array<i64: 1, 128>}, {transform_indices = @transform_10, window_bounds = array<i64: 1, 1, 128>}]} {
    %c0 = arith.constant 0 : index
    %c0_0 = arith.constant 0 : index
    %0 = vector.load %arg1[%c0, %c0_0] : memref<48x48xbf16, #tpu.memory_space<vmem>>, vector<48x48xbf16>
    %c0_1 = arith.constant 0 : index
    %c0_2 = arith.constant 0 : index
    %c0_3 = arith.constant 0 : index
    %1 = vector.load %arg2[%c0_1, %c0_2, %c0_3] : memref<1x48x128xf32, #tpu.memory_space<vmem>>, vector<1x48x128xf32>
    %2 = vector.shape_cast %1 : vector<1x48x128xf32> to vector<48x128xf32>
    %c0_4 = arith.constant 0 : index
    %c0_5 = arith.constant 0 : index
    %3 = vector.load %arg3[%c0_4, %c0_5] : memref<1x128xf32, #tpu.memory_space<vmem>>, vector<1x128xf32>
    %4 = vector.broadcast %3 : vector<1x128xf32> to vector<48x128xf32>
    %5 = arith.mulf %2, %4 : vector<48x128xf32>
    %6 = arith.truncf %5 : vector<48x128xf32> to vector<48x128xbf16>
    %cst = arith.constant dense<0.000000e+00> : vector<48x128xf32>
    %7 = tpu.matmul %0, %6, %cst {dimension_numbers = #tpu.dot_dimension_numbers<[1], [0], [0], [1], [0, 0, 1, 1], [], []>} : vector<48x48xbf16>, vector<48x128xbf16>, vector<48x128xf32> -> vector<48x128xf32>
    %c0_6 = arith.constant 0 : index
    %c0_7 = arith.constant 0 : index
    %8 = vector.load %arg4[%c0_6, %c0_7] : memref<1x128xf32, #tpu.memory_space<vmem>>, vector<1x128xf32>
    %9 = vector.broadcast %8 : vector<1x128xf32> to vector<48x128xf32>
    %10 = arith.addf %7, %9 : vector<48x128xf32>
    %cst_8 = arith.constant 0.000000e+00 : f32
    %11 = vector.broadcast %cst_8 : f32 to vector<48x128xf32>
    %12 = arith.maximumf %10, %11 : vector<48x128xf32>
    %c0_9 = arith.constant 0 : index
    %c0_10 = arith.constant 0 : index
    %13 = vector.load %arg5[%c0_9, %c0_10] : memref<128x128xbf16, #tpu.memory_space<vmem>>, vector<128x128xbf16>
    %c0_11 = arith.constant 0 : index
    %c0_12 = arith.constant 0 : index
    %14 = vector.load %arg6[%c0_11, %c0_12] : memref<1x128xf32, #tpu.memory_space<vmem>>, vector<1x128xf32>
    %15 = arith.truncf %12 : vector<48x128xf32> to vector<48x128xbf16>
    %cst_13 = arith.constant dense<0.000000e+00> : vector<48x128xf32>
    %16 = tpu.matmul %15, %13, %cst_13 {dimension_numbers = #tpu.dot_dimension_numbers<[1], [0], [0], [1], [0, 0, 1, 1], [], []>} : vector<48x128xbf16>, vector<128x128xbf16>, vector<48x128xf32> -> vector<48x128xf32>
    %17 = arith.truncf %16 : vector<48x128xf32> to vector<48x128xbf16>
    %cst_14 = arith.constant dense<0.000000e+00> : vector<48x128xf32>
    %18 = tpu.matmul %0, %17, %cst_14 {dimension_numbers = #tpu.dot_dimension_numbers<[1], [0], [0], [1], [0, 0, 1, 1], [], []>} : vector<48x48xbf16>, vector<48x128xbf16>, vector<48x128xf32> -> vector<48x128xf32>
    %19 = vector.broadcast %14 : vector<1x128xf32> to vector<48x128xf32>
    %20 = arith.addf %18, %19 : vector<48x128xf32>
    %cst_15 = arith.constant 0.000000e+00 : f32
    %21 = vector.broadcast %cst_15 : f32 to vector<48x128xf32>
    %22 = arith.maximumf %20, %21 : vector<48x128xf32>
    %c0_16 = arith.constant 0 : index
    %c0_17 = arith.constant 0 : index
    %23 = vector.load %arg7[%c0_16, %c0_17] : memref<128x128xbf16, #tpu.memory_space<vmem>>, vector<128x128xbf16>
    %c0_18 = arith.constant 0 : index
    %c0_19 = arith.constant 0 : index
    %24 = vector.load %arg8[%c0_18, %c0_19] : memref<1x128xf32, #tpu.memory_space<vmem>>, vector<1x128xf32>
    %25 = arith.truncf %22 : vector<48x128xf32> to vector<48x128xbf16>
    %cst_20 = arith.constant dense<0.000000e+00> : vector<48x128xf32>
    %26 = tpu.matmul %25, %23, %cst_20 {dimension_numbers = #tpu.dot_dimension_numbers<[1], [0], [0], [1], [0, 0, 1, 1], [], []>} : vector<48x128xbf16>, vector<128x128xbf16>, vector<48x128xf32> -> vector<48x128xf32>
    %27 = arith.truncf %26 : vector<48x128xf32> to vector<48x128xbf16>
    %cst_21 = arith.constant dense<0.000000e+00> : vector<48x128xf32>
    %28 = tpu.matmul %0, %27, %cst_21 {dimension_numbers = #tpu.dot_dimension_numbers<[1], [0], [0], [1], [0, 0, 1, 1], [], []>} : vector<48x48xbf16>, vector<48x128xbf16>, vector<48x128xf32> -> vector<48x128xf32>
    %29 = vector.broadcast %24 : vector<1x128xf32> to vector<48x128xf32>
    %30 = arith.addf %28, %29 : vector<48x128xf32>
    %cst_22 = arith.constant 0.000000e+00 : f32
    %31 = vector.broadcast %cst_22 : f32 to vector<48x128xf32>
    %32 = arith.maximumf %30, %31 : vector<48x128xf32>
    %33 = arith.truncf %32 : vector<48x128xf32> to vector<48x128xbf16>
    %c0_23 = arith.constant 0 : index
    %c0_24 = arith.constant 0 : index
    %34 = vector.load %arg9[%c0_23, %c0_24] : memref<128x128xbf16, #tpu.memory_space<vmem>>, vector<128x128xbf16>
    %cst_25 = arith.constant dense<0.000000e+00> : vector<48x128xf32>
    %35 = tpu.matmul %33, %34, %cst_25 {dimension_numbers = #tpu.dot_dimension_numbers<[1], [0], [0], [1], [0, 0, 1, 1], [], []>} : vector<48x128xbf16>, vector<128x128xbf16>, vector<48x128xf32> -> vector<48x128xf32>
    %cst_26 = arith.constant dense<0.000000e+00> : vector<128xf32>
    %36 = vector.multi_reduction <add>, %35, %cst_26 [0] : vector<48x128xf32> to vector<128xf32>
    %37 = vector.shape_cast %36 : vector<128xf32> to vector<1x128xf32>
    %cst_27 = arith.constant 0.020833334 : f32
    %38 = vector.broadcast %cst_27 : f32 to vector<1x128xf32>
    %39 = arith.mulf %37, %38 : vector<1x128xf32>
    %c0_28 = arith.constant 0 : index
    %c0_29 = arith.constant 0 : index
    %40 = vector.load %arg10[%c0_28, %c0_29] : memref<1x128xf32, #tpu.memory_space<vmem>>, vector<1x128xf32>
    %41 = arith.addf %39, %40 : vector<1x128xf32>
    %c0_30 = arith.constant 0 : index
    %c0_31 = arith.constant 0 : index
    %c0_32 = arith.constant 0 : index
    %42 = vector.load %arg11[%c0_30, %c0_31, %c0_32] : memref<1x1x128xf32, #tpu.memory_space<vmem>>, vector<1x1x128xf32>
    %43 = vector.shape_cast %42 : vector<1x1x128xf32> to vector<1x128xf32>
    %44 = vector.shape_cast %41 : vector<1x128xf32> to vector<1x1x128xf32>
    tpu.vector_store %arg11[%c0_30, %c0_31, %c0_32], %44 {strides = array<i32>} : memref<1x1x128xf32, #tpu.memory_space<vmem>>, vector<1x1x128xf32>,
    return
  }
  func.func @transform_0(%arg0: i32) -> (i32, i32) {
    %c0_i32 = arith.constant 0 : i32
    %c0_i32_0 = arith.constant 0 : i32
    %c0_i32_1 = arith.constant 0 : i32
    return %c0_i32, %c0_i32_0 : i32, i32
  }
  func.func @transform_1(%arg0: i32) -> (i32, i32, i32) {
    %c0_i32 = arith.constant 0 : i32
    %c0_i32_0 = arith.constant 0 : i32
    %c0_i32_1 = arith.constant 0 : i32
    return %arg0, %c0_i32, %c0_i32_0 : i32, i32, i32
  }
  func.func @transform_2(%arg0: i32) -> (i32, i32) {
    %c0_i32 = arith.constant 0 : i32
    %c0_i32_0 = arith.constant 0 : i32
    %c0_i32_1 = arith.constant 0 : i32
    return %c0_i32, %c0_i32_0 : i32, i32
  }
  func.func @transform_3(%arg0: i32) -> (i32, i32) {
    %c0_i32 = arith.constant 0 : i32
    %c0_i32_0 = arith.constant 0 : i32
    %c0_i32_1 = arith.constant 0 : i32
    return %c0_i32, %c0_i32_0 : i32, i32
  }
  func.func @transform_4(%arg0: i32) -> (i32, i32) {
    %c0_i32 = arith.constant 0 : i32
    %c0_i32_0 = arith.constant 0 : i32
    %c0_i32_1 = arith.constant 0 : i32
    return %c0_i32, %c0_i32_0 : i32, i32
  }
  func.func @transform_5(%arg0: i32) -> (i32, i32) {
    %c0_i32 = arith.constant 0 : i32
    %c0_i32_0 = arith.constant 0 : i32
    %c0_i32_1 = arith.constant 0 : i32
    return %c0_i32, %c0_i32_0 : i32, i32
  }
  func.func @transform_6(%arg0: i32) -> (i32, i32) {
    %c0_i32 = arith.constant 0 : i32
    %c0_i32_0 = arith.constant 0 : i32
    %c0_i32_1 = arith.constant 0 : i32
    return %c0_i32, %c0_i32_0 : i32, i32
  }
  func.func @transform_7(%arg0: i32) -> (i32, i32) {
    %c0_i32 = arith.constant 0 : i32
    %c0_i32_0 = arith.constant 0 : i32
    %c0_i32_1 = arith.constant 0 : i32
    return %c0_i32, %c0_i32_0 : i32, i32
  }
  func.func @transform_8(%arg0: i32) -> (i32, i32) {
    %c0_i32 = arith.constant 0 : i32
    %c0_i32_0 = arith.constant 0 : i32
    %c0_i32_1 = arith.constant 0 : i32
    return %c0_i32, %c0_i32_0 : i32, i32
  }
  func.func @transform_9(%arg0: i32) -> (i32, i32) {
    %c0_i32 = arith.constant 0 : i32
    %c0_i32_0 = arith.constant 0 : i32
    %c0_i32_1 = arith.constant 0 : i32
    return %c0_i32, %c0_i32_0 : i32, i32
  }
  func.func @transform_10(%arg0: i32) -> (i32, i32, i32) {
    %c0_i32 = arith.constant 0 : i32
    %c0_i32_0 = arith.constant 0 : i32
    %c0_i32_1 = arith.constant 0 : i32
    return %arg0, %c0_i32, %c0_i32_0 : i32, i32, i32
  }
}

</mosaic_0001>

<bundles_post_ra>
// kernel: tpu_custom_call.1
= control target key start
LH: loop header
LB: loop body
LE: loop exit
PB: predicated region body
PF: predicated region fallthrough
CT: control target
= control target key end

     0   :  { %15 = vsyncpa [#allocation3], 0  ;;  %s1445_s0 = inlined_call_operand.hbm [shape: bf16[48,48], index: 0, kind: input, shape index: {}]   ;;  %s1446_s1 = inlined_call_operand.hbm [shape: f32[1,48,128], index: 1, kind: input, shape index: {}]   ;;  %s1447_s2 = inlined_call_operand.vmem [shape: f32[1,128], index: 2, kind: input, shape index: {}]   ;;  %s1448_s3 = inlined_call_operand.vmem [shape: f32[1,128], index: 3, kind: input, shape index: {}]   ;;  %s1449_s4 = inlined_call_operand.hbm [shape: bf16[128,128], index: 4, kind: input, shape index: {}]   ;;  %s1450_s5 = inlined_call_operand.vmem [shape: f32[1,128], index: 5, kind: input, shape index: {}]   ;;  %s1451_s6 = inlined_call_operand.hbm [shape: bf16[128,128], index: 6, kind: input, shape index: {}]   ;;  %s1452_s7 = inlined_call_operand.vmem [shape: f32[1,128], index: 7, kind: input, shape index: {}]   ;;  %s1453_s8 = inlined_call_operand.hbm [shape: bf16[128,128], index: 8, kind: input, shape index: {}]   ;;  %s1454_s9 = inlined_call_operand.vmem [shape: f32[1,128], index: 9, kind: input, shape index: {}]   ;;  %s1455_s10 = inlined_call_operand.hbm [shape: f32[1,1,128], index: 10, kind: output, shape index: {}]  }
   0x1   :  { %16 = vsyncpa [#allocation6], 0 }
   0x2   :  { %17 = vsyncpa [#allocation9], 0 }
   0x3   :  { %18 = vsyncpa [#allocation4], 0  ;;  %s1186_s13 = smov [#allocation5]   ;;  %s1046_s17 = scalar_lea.hbm %s1446_s1, 768 }
   0x4   :  { %s36_s14 = sshll.u32 %s1186_s13, 4  ;;  %p1047_p0 = scmp.ne.s32.totalorder %s1446_s1, %s1046_s17  ;;  %s37_s14 = int_to_ptr.vmem [resolvable:$true] %s36_s14 }
   0x5   :  { %p1050_p1 = scmp.lt.u32.totalorder %s1046_s17, %s1446_s1 }
   0x7   :  { %p1052_p2 = pnand %p1050_p1, %p1047_p0 }
   0x9   :  { %1055 = shalt.err (!%p1052_p2)
}
   0xa   :  { %s1056_s22 = scalar_lea.vmem %s37_s14, 768  ;;  %p1061_p4 = scmp.lt.s32.totalorder %s37_s14, %s37_s14 }
   0xb   :  { %p1057_p3 = scmp.ne.s32.totalorder %s37_s14, %s1056_s22  ;;  %p1062_p5 = scmp.lt.s32.totalorder %s1056_s22, %s1056_s22 }
   0xd   :  { %p1063_p6 = por %p1062_p5, %p1061_p4 }
   0xf   :  { %p1064_p7 = pnand %p1063_p6, %p1057_p3 }
  0x11   :  { %1067 = shalt.err (!%p1064_p7)
}
  0x12   :  { %s1187_s23 = smov 128   ;;  %s1188_s24 = smov 8  }
  0x13   :  { %42 = dma.hbm_to_vmem [thread:$0]  %s1446_s1, 768, %s37_s14, [#allocation6], %s1187_s23, %s1187_s23, %s1188_s24  }
  0x14   :  { %s1189_s27 = smov [#allocation8]   ;;  %s1190_s29 = smov [#allocation2]  }
  0x15   :  { %s66_s28 = sshll.u32 %s1189_s27, 4  ;;  %s24_s30 = sshll.u32 %s1190_s29, 4  ;;  %s67_s28 = int_to_ptr.vmem [resolvable:$true] %s66_s28  ;;  %s25_s30 = int_to_ptr.vmem [resolvable:$true] %s24_s30 }
  0x16   :  { %s1068_s13 = scalar_lea.hbm %s1451_s6, 1024 }
  0x17   :  { %p1069_p8 = scmp.ne.s32.totalorder %s1451_s6, %s1068_s13  ;;  %p1072_p9 = scmp.lt.u32.totalorder %s1068_s13, %s1451_s6 }
  0x19   :  { %p1074_p10 = pnand %p1072_p9, %p1069_p8 }
  0x1b   :  { %1077 = shalt.err (!%p1074_p10)
}
  0x1c   :  { %s1078_s1 = scalar_lea.vmem %s67_s28, 1024  ;;  %p1083_p12 = scmp.lt.s32.totalorder %s67_s28, %s67_s28 }
  0x1d   :  { %p1079_p11 = scmp.ne.s32.totalorder %s67_s28, %s1078_s1  ;;  %p1084_p13 = scmp.lt.s32.totalorder %s1078_s1, %s1078_s1 }
  0x1f   :  { %p1085_p0 = por %p1084_p13, %p1083_p12 }
  0x21   :  { %p1086_p1 = pnand %p1085_p0, %p1079_p11 }
  0x23   :  { %1089 = shalt.err (!%p1086_p1)
}
  0x24   :  { %s1191_s14 = smov 64   ;;  %s1192_s19 = smov 4  }
  0x25   :  { %72 = dma.hbm_to_vmem [thread:$0]  %s1451_s6, 1024, %s67_s28, [#allocation9], %s1191_s14, %s1191_s14, %s1192_s19  }
  0x26   :  { %s1090_s24 = scalar_lea.hbm %s1445_s0, 384 }
  0x27   :  { %p1091_p2 = scmp.ne.s32.totalorder %s1445_s0, %s1090_s24  ;;  %p1094_p3 = scmp.lt.u32.totalorder %s1090_s24, %s1445_s0 }
  0x29   :  { %p1096_p4 = pnand %p1094_p3, %p1091_p2 }
  0x2b   :  { %1099 = shalt.err (!%p1096_p4)
}
  0x2c   :  { %s1100_s11 = scalar_lea.vmem %s25_s30, 384  ;;  %p1105_p6 = scmp.lt.s32.totalorder %s25_s30, %s25_s30 }
  0x2d   :  { %p1101_p5 = scmp.ne.s32.totalorder %s25_s30, %s1100_s11  ;;  %p1106_p7 = scmp.lt.s32.totalorder %s1100_s11, %s1100_s11 }
  0x2f   :  { %p1107_p8 = por %p1106_p7, %p1105_p6 }
  0x31   :  { %p1108_p9 = pnand %p1107_p8, %p1101_p5 }
  0x33   :  { %1111 = shalt.err (!%p1108_p9)
}
  0x34   :  { %30 = dma.hbm_to_vmem [thread:$0]  %s1445_s0, 384, %s25_s30, [#allocation3], %s1191_s14, %s1191_s14, %s1192_s19  }
  0x35   :  { %s1193_s12 = smov [#allocation7]   ;;  %s1194_s15 = smov [#allocation10]  }
  0x36   :  { %s52_s13 = sshll.u32 %s1193_s12, 4  ;;  %s80_s16 = sshll.u32 %s1194_s15, 4  ;;  %s53_s13 = int_to_ptr.vmem [resolvable:$true] %s52_s13  ;;  %s81_s16 = int_to_ptr.vmem [resolvable:$true] %s80_s16 }
  0x37   :  { %s1112_s1 = scalar_lea.hbm %s1449_s4, 1024 }
  0x38   :  { %p1113_p10 = scmp.ne.s32.totalorder %s1449_s4, %s1112_s1  ;;  %p1116_p11 = scmp.lt.u32.totalorder %s1112_s1, %s1449_s4 }
  0x3a   :  { %p1118_p12 = pnand %p1116_p11, %p1113_p10 }
  0x3c   :  { %1121 = shalt.err (!%p1118_p12)
}
  0x3d   :  { %s1122_s0 = scalar_lea.vmem %s53_s13, 1024  ;;  %p1127_p0 = scmp.lt.s32.totalorder %s53_s13, %s53_s13 }
  0x3e   :  { %p1123_p13 = scmp.ne.s32.totalorder %s53_s13, %s1122_s0  ;;  %p1128_p1 = scmp.lt.s32.totalorder %s1122_s0, %s1122_s0 }
  0x40   :  { %p1129_p2 = por %p1128_p1, %p1127_p0 }
  0x42   :  { %p1130_p3 = pnand %p1129_p2, %p1123_p13 }
  0x44   :  { %1133 = shalt.err (!%p1130_p3)
}
  0x45   :  { %58 = dma.hbm_to_vmem [thread:$0]  %s1449_s4, 1024, %s53_s13, [#allocation6], %s1191_s14, %s1191_s14, %s1192_s19  }
  0x46   :  { %s1134_s27 = scalar_lea.hbm %s1453_s8, 1024 }
  0x47   :  { %p1135_p4 = scmp.ne.s32.totalorder %s1453_s8, %s1134_s27  ;;  %p1138_p5 = scmp.lt.u32.totalorder %s1134_s27, %s1453_s8 }
  0x49   :  { %p1140_p6 = pnand %p1138_p5, %p1135_p4 }
  0x4b   :  { %1143 = shalt.err (!%p1140_p6)
}
  0x4c   :  { %s1144_s12 = scalar_lea.vmem %s81_s16, 1024  ;;  %p1149_p8 = scmp.lt.s32.totalorder %s81_s16, %s81_s16 }
  0x4d   :  { %p1145_p7 = scmp.ne.s32.totalorder %s81_s16, %s1144_s12  ;;  %p1150_p9 = scmp.lt.s32.totalorder %s1144_s12, %s1144_s12 }
  0x4f   :  { %p1151_p10 = por %p1150_p9, %p1149_p8 }
  0x51   :  { %p1152_p11 = pnand %p1151_p10, %p1145_p7 }
  0x53   :  { %1155 = shalt.err (!%p1152_p11)
}
  0x54   :  { %86 = dma.hbm_to_vmem [thread:$0]  %s1453_s8, 1024, %s81_s16, [#allocation9], %s1191_s14, %s1191_s14, %s1192_s19  }
  0x55   :  { %1178 = dma.done.wait [#allocation3], 384  }
  0x56   :  { %1179 = vsyncadd [#allocation3], 4294966912 }
  0x57   :  { %1180 = dma.done.wait [#allocation6], 1792  }
  0x58   :  { %1181 = vsyncadd [#allocation6], 4294965504 }
  0x59   :  { %1182 = dma.done.wait [#allocation9], 2048  }
  0x5a   :  { %1183 = vsyncadd [#allocation9], 4294965248  ;;  %v1195_v0 = vmov 0.0   ;;  %vm1196_vm0 = vmmov 0   ;;  %v111_v1 = vld [vmem:[#allocation5] sm:$0xff]  ;;  %v112_v2 = vld [vmem:[#allocation5 + $0x8] sm:$0xff] }
  0x5b   :  { %869 = vmatprep.subr.bf16.mxu1 %v1195_v0  ;;  %875 = vmatprep.mubr.msk.bf16.mxu1 %vm1196_vm0, %v1195_v0  ;;  %v778_v3 = vld [vmem:[%s1447_s2] ss:$0 sm:$0xff]  ;;  %v113_v6 = vld [vmem:[#allocation5 + $0x10] sm:$0xff]  ;;  %v114_v7 = vld [vmem:[#allocation5 + $0x18] sm:$0xff]  ;;  %vm155_vm1 = vcmask 392192   ;;  %s1197_s18 = smov [#allocation11]  }
  0x5c   :  { %915 = vmatprep.subr.bf16.mxu0 %v1195_v0  ;;  %921 = vmatprep.mubr.msk.bf16.mxu0 %vm1196_vm0, %v1195_v0  ;;  %v124_v4 = vmul.f32 %v778_v3, %v111_v1  ;;  %v125_v5 = vmul.f32 %v778_v3, %v112_v2  ;;  %v115_v8 = vld [vmem:[#allocation5 + $0x20] sm:$0xff]  ;;  %v126_v9 = vmul.f32 %v778_v3, %v113_v6  ;;  %v116_v11 = vld [vmem:[#allocation5 + $0x28] sm:$0xff]  ;;  %v1022_v18 = vld [vmem:[#allocation7] sm:$0xff]   ;;  %s767_s1 = sshll.u32 %s1197_s18, 4  ;;  %s768_s1 = int_to_ptr.vmem [resolvable:$true] %s767_s1 }
  0x5d   :  { %v127_v10 = vmul.f32 %v778_v3, %v114_v7  ;;  %v128_v14 = vmul.f32 %v778_v3, %v115_v8  ;;  %v129_v15 = vmul.f32 %v778_v3, %v116_v11  ;;  %v1336_v17 = vld [vmem:[#allocation2] sm:$0xff]   ;;  %v1023_v19 = vld [vmem:[#allocation7 + $0x8] sm:$0xff]   ;;  %v1343_v20 = vld [vmem:[#allocation2 + $0x8] sm:$0xff]   ;;  %s1156_s20 = scalar_lea.vmem %s768_s1, 16  ;;  %s1160_s21 = scalar_lea.vmem %s768_s1, 32 }
  0x5e   :  { %v130_v12 = vpack.c.bf16 %v125_v5, %v124_v4  ;;  %v1024_v21 = vld [vmem:[#allocation7 + $0x10] sm:$0xff]   ;;  %v1025_v22 = vld [vmem:[#allocation7 + $0x18] sm:$0xff]   ;;  %v1352_v23 = vld [vmem:[#allocation2 + $0x10] sm:$0xff]   ;;  %p1157_p12 = scmp.ne.s32.totalorder %s768_s1, %s1156_s20  ;;  %p1161_p13 = scmp.lt.s32.totalorder %s768_s1, %s768_s1 }
  0x5f   :  { %v131_v13 = vpack.c.bf16 %v127_v10, %v126_v9  ;;  %v132_v16 = vpack.c.bf16 %v129_v15, %v128_v14  ;;  %v1026_v24 = vld [vmem:[#allocation7 + $0x20] sm:$0xff]   ;;  %v1027_v25 = vld [vmem:[#allocation7 + $0x28] sm:$0xff]   ;;  %v1028_v26 = vld [vmem:[#allocation7 + $0x30] sm:$0xff]   ;;  %p1162_p0 = scmp.lt.s32.totalorder %s1160_s21, %s1156_s20 }
  0x60   :  { %870 = vmatpush3.bf16.msra.mxu1 %v130_v12  ;;  %v1029_v27 = vld [vmem:[#allocation7 + $0x38] sm:$0xff]   ;;  %v1030_v56 = vld [vmem:[#allocation8] sm:$0xff]   ;;  %v1031_v57 = vld [vmem:[#allocation8 + $0x8] sm:$0xff]  }
  0x61   :  { %871 = vmatprep.subr.bf16.mxu1 %v1195_v0  ;;  %v779_v28 = vld [vmem:[%s1448_s3] ss:$0 sm:$0xff]  ;;  %v1032_v58 = vld [vmem:[#allocation8 + $0x10] sm:$0xff]   ;;  %v1034_v60 = vld [vmem:[#allocation8 + $0x20] sm:$0xff]   ;;  %p1163_p1 = por %p1162_p0, %p1161_p13 }
  0x62   :  { %v1033_v59 = vld [vmem:[#allocation8 + $0x18] sm:$0xff]   ;;  %v1035_v61 = vld [vmem:[#allocation8 + $0x28] sm:$0xff]   ;;  %v1036_v14 = vld [vmem:[#allocation8 + $0x30] sm:$0xff]  }
  0x63   :  { %v1037_v15 = vld [vmem:[#allocation8 + $0x38] sm:$0xff]   ;;  %p1164_p2 = pnand %p1163_p1, %p1157_p12 }
  0x64   :  { %872 = vmatpush3.bf16.msra.mxu1 %v131_v13 }
  0x65   :  { %873 = vmatprep.subr.bf16.mxu1 %v1195_v0 }
  0x68   :  { %874 = vmatpush3.bf16.msra.mxu1 %v132_v16  ;;  %v794_v16 = vld [vmem:[%s1450_s5] ss:$0 sm:$0xff] }
  0x69   :  { %887 = vmatprep.subr.bf16.mxu1 %v1195_v0 }
  0x6b   :  { %876 = vmatmul.mubr.msk.bf16.vlgmr.msra.gmra.mrb[0].mxu1 %vm155_vm1, %v1336_v17 }
  0x6c   :  { %879 = vmatprep.mubr.msk.bf16.mxu1 %vm1196_vm0, %v1195_v0  ;;  %888 = vmatpush3.bf16.msra.mxu1 %v1022_v18 }
  0x6d   :  { %889 = vmatprep.subr.bf16.mxu1 %v1195_v0 }
  0x70   :  { %890 = vmatpush3.bf16.msra.mxu1 %v1023_v19 }
  0x71   :  { %891 = vmatprep.subr.bf16.mxu1 %v1195_v0 }
  0x73   :  { %880 = vmatmul.mubr.msk.bf16.gmra.mrb[4].mxu1 %vm155_vm1, %v1343_v20 }
  0x74   :  { %883 = vmatprep.mubr.msk.bf16.mxu1 %vm1196_vm0, %v1195_v0  ;;  %892 = vmatpush3.bf16.msra.mxu1 %v1024_v21 }
  0x75   :  { %893 = vmatprep.subr.bf16.mxu1 %v1195_v0 }
  0x78   :  { %894 = vmatpush3.bf16.msra.mxu1 %v1025_v22 }
  0x79   :  { %895 = vmatprep.subr.bf16.mxu1 %v1195_v0 }
  0x7b   :  { %884 = vmatmul.mubr.msk.bf16.gmra.mrb[8].mxu1 %vm155_vm1, %v1352_v23 }
  0x7c   :  { %896 = vmatpush3.bf16.msra.mxu1 %v1026_v24  ;;  %903 = vmatprep.mubr.msk.bf16.mxu1 %vm1196_vm0, %v1195_v0 }
  0x7d   :  { %897 = vmatprep.subr.bf16.mxu1 %v1195_v0 }
  0x80   :  { %898 = vmatpush3.bf16.msra.mxu1 %v1027_v25 }
  0x81   :  { %899 = vmatprep.subr.bf16.mxu1 %v1195_v0 }
  0x84   :  { %900 = vmatpush3.bf16.msra.mxu1 %v1028_v26 }
  0x85   :  { %901 = vmatprep.subr.bf16.mxu1 %v1195_v0 }
  0x88   :  { %902 = vmatpush3.bf16.msra.mxu1 %v1029_v27 }
  0x89   :  { %933 = vmatprep.subr.bf16.mxu1 %v1195_v0 }
 0x13e   :  { %v199_v29 = vpop.f32.mrb[0].mxu1 }
 0x13f   :  { %v200_v30 = vadd.f32 %v779_v28, %v199_v29  ;;  %v877_v31 = vpop.f32.mrb[1].mxu1 }
 0x140   :  { %v202_v32 = vpop.f32.mrb[2].mxu1 }
 0x141   :  { %v203_v33 = vadd.f32 %v779_v28, %v202_v32  ;;  %v878_v34 = vpop.f32.mrb[3].mxu1  ;;  %v222_v35 = vmax.f32 %v200_v30, 0.0 }
 0x143   :  { %v223_v36 = vmax.f32 %v203_v33, 0.0 }
 0x145   :  { %v245_v37 = vpack.c.bf16 %v223_v36, %v222_v35 }
 0x146   :  { %v207_v38 = vpop.f32.mrb[4].mxu1 }
 0x147   :  { %v208_v39 = vadd.f32 %v779_v28, %v207_v38  ;;  %v881_v40 = vpop.f32.mrb[5].mxu1  ;;  %904 = vmatmul.mubr.bf16.vlgmr.msra.gmra.mrb[12].mxu1 %v245_v37 }
 0x148   :  { %v210_v41 = vpop.f32.mrb[6].mxu1  ;;  %907 = vmatprep.mubr.msk.bf16.mxu1 %vm1196_vm0, %v1195_v0  ;;  %934 = vmatpush3.bf16.msra.mxu1 %v1030_v56 }
 0x149   :  { %v211_v42 = vadd.f32 %v779_v28, %v210_v41  ;;  %v882_v43 = vpop.f32.mrb[7].mxu1  ;;  %v224_v44 = vmax.f32 %v208_v39, 0.0  ;;  %935 = vmatprep.subr.bf16.mxu1 %v1195_v0 }
 0x14b   :  { %v225_v45 = vmax.f32 %v211_v42, 0.0 }
 0x14c   :  { %936 = vmatpush3.bf16.msra.mxu1 %v1031_v57 }
 0x14d   :  { %v246_v46 = vpack.c.bf16 %v225_v45, %v224_v44  ;;  %937 = vmatprep.subr.bf16.mxu1 %v1195_v0 }
 0x14e   :  { %v215_v47 = vpop.f32.mrb[8].mxu1 }
 0x14f   :  { %v216_v48 = vadd.f32 %v779_v28, %v215_v47  ;;  %v885_v49 = vpop.f32.mrb[9].mxu1  ;;  %908 = vmatmul.mubr.bf16.gmra.mrb[16].mxu1 %v246_v46 }
 0x150   :  { %v218_v50 = vpop.f32.mrb[10].mxu1  ;;  %911 = vmatprep.mubr.msk.bf16.mxu1 %vm1196_vm0, %v1195_v0  ;;  %938 = vmatpush3.bf16.msra.mxu1 %v1032_v58 }
 0x151   :  { %v219_v51 = vadd.f32 %v779_v28, %v218_v50  ;;  %v886_v52 = vpop.f32.mrb[11].mxu1  ;;  %v226_v53 = vmax.f32 %v216_v48, 0.0  ;;  %939 = vmatprep.subr.bf16.mxu1 %v1195_v0 }
 0x153   :  { %v227_v54 = vmax.f32 %v219_v51, 0.0 }
 0x154   :  { %940 = vmatpush3.bf16.msra.mxu1 %v1033_v59 }
 0x155   :  { %v247_v55 = vpack.c.bf16 %v227_v54, %v226_v53  ;;  %941 = vmatprep.subr.bf16.mxu1 %v1195_v0 }
 0x157   :  { %912 = vmatmul.mubr.bf16.gmra.mrb[20].mxu1 %v247_v55 }
 0x158   :  { %949 = vmatprep.mubr.msk.bf16.mxu1 %vm1196_vm0, %v1195_v0  ;;  %942 = vmatpush3.bf16.msra.mxu1 %v1034_v60 }
 0x159   :  { %943 = vmatprep.subr.bf16.mxu1 %v1195_v0 }
 0x15c   :  { %944 = vmatpush3.bf16.msra.mxu1 %v1035_v61 }
 0x15d   :  { %945 = vmatprep.subr.bf16.mxu1 %v1195_v0 }
 0x160   :  { %946 = vmatpush3.bf16.msra.mxu1 %v1036_v14 }
 0x161   :  { %947 = vmatprep.subr.bf16.mxu1 %v1195_v0 }
 0x164   :  { %948 = vmatpush3.bf16.msra.mxu1 %v1037_v15 }
 0x21a   :  { %v330_v62 = vpop.f32.mrb[12].mxu1 }
 0x21b   :  { %v905_v63 = vpop.f32.mrb[13].mxu1 }
 0x21c   :  { %v333_v1 = vpop.f32.mrb[14].mxu1  ;;  %v1039_v63 = vld [vmem:[#allocation10 + $0x8] sm:$0xff]  }
 0x21d   :  { %v353_v2 = vpack.c.bf16 %v333_v1, %v330_v62  ;;  %v906_v3 = vpop.f32.mrb[15].mxu1  ;;  %v1038_v62 = vld [vmem:[#allocation10] sm:$0xff]   ;;  %v1040_v1 = vld [vmem:[#allocation10 + $0x10] sm:$0xff]  }
 0x21e   :  { %v1043_v3 = vld [vmem:[#allocation10 + $0x28] sm:$0xff]  }
 0x21f   :  { %916 = vmatpush3.bf16.msra.mxu0 %v353_v2  ;;  %v1041_v2 = vld [vmem:[#allocation10 + $0x18] sm:$0xff]  }
 0x220   :  { %917 = vmatprep.subr.bf16.mxu0 %v1195_v0 }
 0x222   :  { %v338_v4 = vpop.f32.mrb[16].mxu1 }
 0x223   :  { %v909_v5 = vpop.f32.mrb[17].mxu1 }
 0x224   :  { %v341_v6 = vpop.f32.mrb[18].mxu1 }
 0x225   :  { %v354_v7 = vpack.c.bf16 %v341_v6, %v338_v4  ;;  %v910_v8 = vpop.f32.mrb[19].mxu1  ;;  %v1045_v4 = vld [vmem:[#allocation10 + $0x38] sm:$0xff]  }
 0x227   :  { %918 = vmatpush3.bf16.msra.mxu0 %v354_v7 }
 0x228   :  { %919 = vmatprep.subr.bf16.mxu0 %v1195_v0 }
 0x22a   :  { %v346_v9 = vpop.f32.mrb[20].mxu1 }
 0x22b   :  { %v913_v10 = vpop.f32.mrb[21].mxu1 }
 0x22c   :  { %v349_v11 = vpop.f32.mrb[22].mxu1 }
 0x22d   :  { %v355_v12 = vpack.c.bf16 %v349_v11, %v346_v9  ;;  %v914_v13 = vpop.f32.mrb[23].mxu1 }
 0x22f   :  { %920 = vmatpush3.bf16.msra.mxu0 %v355_v12 }
 0x230   :  { %961 = vmatprep.subr.bf16.mxu0 %v1195_v0 }
 0x232   :  { %922 = vmatmul.mubr.msk.bf16.vlgmr.msra.gmra.mrb[0].mxu0 %vm155_vm1, %v1336_v17 }
 0x233   :  { %925 = vmatprep.mubr.msk.bf16.mxu0 %vm1196_vm0, %v1195_v0 }
 0x23a   :  { %926 = vmatmul.mubr.msk.bf16.gmra.mrb[4].mxu0 %vm155_vm1, %v1343_v20 }
 0x23b   :  { %929 = vmatprep.mubr.msk.bf16.mxu0 %vm1196_vm0, %v1195_v0 }
 0x242   :  { %930 = vmatmul.mubr.msk.bf16.gmra.mrb[8].mxu0 %vm155_vm1, %v1352_v23 }
 0x243   :  { %967 = vmatprep.mubr.msk.bf16.mxu0 %vm1196_vm0, %v1195_v0 }
 0x305   :  { %v396_v18 = vpop.f32.mrb[0].mxu0 }
 0x306   :  { %v397_v19 = vadd.f32 %v794_v16, %v396_v18  ;;  %v923_v21 = vpop.f32.mrb[1].mxu0 }
 0x307   :  { %v399_v22 = vpop.f32.mrb[2].mxu0 }
 0x308   :  { %v400_v24 = vadd.f32 %v794_v16, %v399_v22  ;;  %v924_v25 = vpop.f32.mrb[3].mxu0  ;;  %v419_v26 = vmax.f32 %v397_v19, 0.0 }
 0x30a   :  { %v420_v27 = vmax.f32 %v400_v24, 0.0 }
 0x30c   :  { %v442_v28 = vpack.c.bf16 %v420_v27, %v419_v26 }
 0x30d   :  { %v404_v29 = vpop.f32.mrb[4].mxu0 }
 0x30e   :  { %v405_v30 = vadd.f32 %v794_v16, %v404_v29  ;;  %v927_v31 = vpop.f32.mrb[5].mxu0  ;;  %950 = vmatmul.mubr.bf16.vlgmr.msra.gmra.mrb[24].mxu1 %v442_v28 }
 0x30f   :  { %v407_v32 = vpop.f32.mrb[6].mxu0  ;;  %953 = vmatprep.mubr.msk.bf16.mxu1 %vm1196_vm0, %v1195_v0 }
 0x310   :  { %v408_v33 = vadd.f32 %v794_v16, %v407_v32  ;;  %v928_v34 = vpop.f32.mrb[7].mxu0  ;;  %v421_v35 = vmax.f32 %v405_v30, 0.0 }
 0x312   :  { %v422_v36 = vmax.f32 %v408_v33, 0.0 }
 0x314   :  { %v443_v37 = vpack.c.bf16 %v422_v36, %v421_v35 }
 0x315   :  { %v412_v38 = vpop.f32.mrb[8].mxu0 }
 0x316   :  { %v413_v39 = vadd.f32 %v794_v16, %v412_v38  ;;  %v931_v40 = vpop.f32.mrb[9].mxu0  ;;  %954 = vmatmul.mubr.bf16.gmra.mrb[28].mxu1 %v443_v37 }
 0x317   :  { %v415_v41 = vpop.f32.mrb[10].mxu0  ;;  %957 = vmatprep.mubr.msk.bf16.mxu1 %vm1196_vm0, %v1195_v0 }
 0x318   :  { %v416_v42 = vadd.f32 %v794_v16, %v415_v41  ;;  %v932_v43 = vpop.f32.mrb[11].mxu0  ;;  %v423_v44 = vmax.f32 %v413_v39, 0.0 }
 0x31a   :  { %v424_v45 = vmax.f32 %v416_v42, 0.0 }
 0x31c   :  { %v444_v46 = vpack.c.bf16 %v424_v45, %v423_v44 }
 0x31e   :  { %958 = vmatmul.mubr.bf16.gmra.mrb[32].mxu1 %v444_v46 }
 0x3e1   :  { %v527_v47 = vpop.f32.mrb[24].mxu1 }
 0x3e2   :  { %v951_v48 = vpop.f32.mrb[25].mxu1 }
 0x3e3   :  { %v530_v49 = vpop.f32.mrb[26].mxu1 }
 0x3e4   :  { %v550_v50 = vpack.c.bf16 %v530_v49, %v527_v47  ;;  %v952_v51 = vpop.f32.mrb[27].mxu1 }
 0x3e6   :  { %962 = vmatpush3.bf16.msra.mxu0 %v550_v50 }
 0x3e7   :  { %963 = vmatprep.subr.bf16.mxu0 %v1195_v0 }
 0x3e9   :  { %v535_v52 = vpop.f32.mrb[28].mxu1 }
 0x3ea   :  { %v955_v53 = vpop.f32.mrb[29].mxu1 }
 0x3eb   :  { %v538_v54 = vpop.f32.mrb[30].mxu1 }
 0x3ec   :  { %v551_v55 = vpack.c.bf16 %v538_v54, %v535_v52  ;;  %v956_v56 = vpop.f32.mrb[31].mxu1 }
 0x3ee   :  { %964 = vmatpush3.bf16.msra.mxu0 %v551_v55 }
 0x3ef   :  { %965 = vmatprep.subr.bf16.mxu0 %v1195_v0 }
 0x3f1   :  { %v543_v57 = vpop.f32.mrb[32].mxu1 }
 0x3f2   :  { %v959_v58 = vpop.f32.mrb[33].mxu1 }
 0x3f3   :  { %v546_v59 = vpop.f32.mrb[34].mxu1 }
 0x3f4   :  { %v552_v60 = vpack.c.bf16 %v546_v59, %v543_v57  ;;  %v960_v61 = vpop.f32.mrb[35].mxu1  ;;  %v758_v57 = vld [vmem:[%s1454_s9] sm:$0x1] }
 0x3f6   :  { %966 = vmatpush3.bf16.msra.mxu0 %v552_v60 }
 0x3f7   :  { %979 = vmatprep.subr.bf16.mxu0 %v1195_v0 }
 0x3f9   :  { %968 = vmatmul.mubr.msk.bf16.vlgmr.msra.gmra.mrb[12].mxu0 %vm155_vm1, %v1336_v17  ;;  %v1042_v17 = vld [vmem:[#allocation10 + $0x20] sm:$0xff]  }
 0x3fa   :  { %971 = vmatprep.mubr.msk.bf16.mxu0 %vm1196_vm0, %v1195_v0  ;;  %980 = vmatpush3.bf16.msra.mxu0 %v1038_v62 }
 0x3fb   :  { %981 = vmatprep.subr.bf16.mxu0 %v1195_v0 }
 0x3fe   :  { %982 = vmatpush3.bf16.msra.mxu0 %v1039_v63 }
 0x3ff   :  { %983 = vmatprep.subr.bf16.mxu0 %v1195_v0 }
 0x401   :  { %972 = vmatmul.mubr.msk.bf16.gmra.mrb[16].mxu0 %vm155_vm1, %v1343_v20  ;;  %v1044_v20 = vld [vmem:[#allocation10 + $0x30] sm:$0xff]  }
 0x402   :  { %975 = vmatprep.mubr.msk.bf16.mxu0 %vm1196_vm0, %v1195_v0  ;;  %984 = vmatpush3.bf16.msra.mxu0 %v1040_v1 }
 0x403   :  { %985 = vmatprep.subr.bf16.mxu0 %v1195_v0 }
 0x406   :  { %986 = vmatpush3.bf16.msra.mxu0 %v1041_v2 }
 0x407   :  { %987 = vmatprep.subr.bf16.mxu0 %v1195_v0 }
 0x409   :  { %976 = vmatmul.mubr.msk.bf16.gmra.mrb[20].mxu0 %vm155_vm1, %v1352_v23  ;;  %v806_v23 = vld [vmem:[%s1452_s7] ss:$0 sm:$0xff] }
 0x40a   :  { %988 = vmatpush3.bf16.msra.mxu0 %v1042_v17  ;;  %995 = vmatprep.mubr.msk.bf16.mxu0 %vm1196_vm0, %v1195_v0 }
 0x40b   :  { %989 = vmatprep.subr.bf16.mxu0 %v1195_v0 }
 0x40e   :  { %990 = vmatpush3.bf16.msra.mxu0 %v1043_v3 }
 0x40f   :  { %991 = vmatprep.subr.bf16.mxu0 %v1195_v0 }
 0x412   :  { %992 = vmatpush3.bf16.msra.mxu0 %v1044_v20 }
 0x413   :  { %993 = vmatprep.subr.bf16.mxu0 %v1195_v0 }
 0x416   :  { %994 = vmatpush3.bf16.msra.mxu0 %v1045_v4 }
 0x4cc   :  { %v593_v5 = vpop.f32.mrb[12].mxu0 }
 0x4cd   :  { %v594_v6 = vadd.f32 %v806_v23, %v593_v5  ;;  %v969_v7 = vpop.f32.mrb[13].mxu0 }
 0x4ce   :  { %v596_v8 = vpop.f32.mrb[14].mxu0 }
 0x4cf   :  { %v597_v9 = vadd.f32 %v806_v23, %v596_v8  ;;  %v970_v10 = vpop.f32.mrb[15].mxu0  ;;  %v616_v11 = vmax.f32 %v594_v6, 0.0 }
 0x4d1   :  { %v617_v12 = vmax.f32 %v597_v9, 0.0 }
 0x4d3   :  { %v622_v13 = vpack.c.bf16 %v617_v12, %v616_v11 }
 0x4d4   :  { %v601_v14 = vpop.f32.mrb[16].mxu0 }
 0x4d5   :  { %v602_v15 = vadd.f32 %v806_v23, %v601_v14  ;;  %v973_v16 = vpop.f32.mrb[17].mxu0  ;;  %996 = vmatmul.mubr.bf16.vlgmr.msra.gmra.mrb[24].mxu0 %v622_v13 }
 0x4d6   :  { %v604_v18 = vpop.f32.mrb[18].mxu0  ;;  %999 = vmatprep.mubr.msk.bf16.mxu0 %vm1196_vm0, %v1195_v0 }
 0x4d7   :  { %v605_v19 = vadd.f32 %v806_v23, %v604_v18  ;;  %v974_v21 = vpop.f32.mrb[19].mxu0  ;;  %v618_v22 = vmax.f32 %v602_v15, 0.0 }
 0x4d9   :  { %v619_v24 = vmax.f32 %v605_v19, 0.0 }
 0x4db   :  { %v623_v25 = vpack.c.bf16 %v619_v24, %v618_v22 }
 0x4dc   :  { %v609_v26 = vpop.f32.mrb[20].mxu0 }
 0x4dd   :  { %v610_v27 = vadd.f32 %v806_v23, %v609_v26  ;;  %v977_v28 = vpop.f32.mrb[21].mxu0  ;;  %1000 = vmatmul.mubr.bf16.gmra.mrb[28].mxu0 %v623_v25 }
 0x4de   :  { %v612_v29 = vpop.f32.mrb[22].mxu0  ;;  %1003 = vmatprep.mubr.msk.bf16.mxu0 %vm1196_vm0, %v1195_v0 }
 0x4df   :  { %v613_v30 = vadd.f32 %v806_v23, %v612_v29  ;;  %v978_v31 = vpop.f32.mrb[23].mxu0  ;;  %v620_v32 = vmax.f32 %v610_v27, 0.0 }
 0x4e1   :  { %v621_v33 = vmax.f32 %v613_v30, 0.0 }
 0x4e3   :  { %v624_v34 = vpack.c.bf16 %v621_v33, %v620_v32 }
 0x4e5   :  { %1004 = vmatmul.mubr.bf16.gmra.mrb[32].mxu0 %v624_v34 }
 0x5a8   :  { %v723_v35 = vpop.f32.mrb[24].mxu0 }
 0x5a9   :  { %v997_v36 = vpop.f32.mrb[25].mxu0 }
 0x5aa   :  { %v726_v37 = vpop.f32.mrb[26].mxu0 }
 0x5ab   :  { %v746_v38 = vadd.f32 %v726_v37, %v723_v35  ;;  %v998_v39 = vpop.f32.mrb[27].mxu0 }
 0x5b0   :  { %v731_v40 = vpop.f32.mrb[28].mxu0 }
 0x5b1   :  { %v747_v41 = vadd.f32 %v746_v38, %v731_v40  ;;  %v1001_v42 = vpop.f32.mrb[29].mxu0 }
 0x5b2   :  { %v734_v43 = vpop.f32.mrb[30].mxu0 }
 0x5b3   :  { %v748_v44 = vadd.f32 %v747_v41, %v734_v43  ;;  %v1002_v45 = vpop.f32.mrb[31].mxu0 }
 0x5b8   :  { %v739_v46 = vpop.f32.mrb[32].mxu0 }
 0x5b9   :  { %v749_v47 = vadd.f32 %v748_v44, %v739_v46  ;;  %v1005_v0 = vpop.f32.mrb[33].mxu0 }
 0x5ba   :  { %v742_v48 = vpop.f32.mrb[34].mxu0 }
 0x5bb   :  { %v750_v49 = vadd.f32 %v749_v47, %v742_v48  ;;  %v1006_v50 = vpop.f32.mrb[35].mxu0 }
 0x5bd   :  { %v751_v51 = vrot.slane %v750_v49, 4 }
 0x5bf   :  { %v752_v52 = vadd.f32 %v751_v51, %v750_v49 }
 0x5c1   :  { %v753_v53 = vrot.slane %v752_v52, 2 }
 0x5c3   :  { %v754_v54 = vadd.f32 %v753_v53, %v752_v52 }
 0x5c5   :  { %v755_v55 = vrot.slane %v754_v54, 1 }
 0x5c7   :  { %v756_v56 = vadd.f32 %v755_v55, %v754_v54 }
 0x5c9   :  { %v757_v58 = vmul.f32 0.020833334, %v756_v56 }
 0x5cb   :  { %v759_v59 = vadd.f32 %v758_v57, %v757_v58 }
 0x5cd   :  { %760 = vst [vmem:[#allocation11] sm:$0x1] %v759_v59 }
 0x5ce   :  { %1167 = shalt.err (!%p1164_p2)
}
 0x5cf   :  { %s1168_s0 = scalar_lea.hbm %s1455_s10, 16 }
 0x5d0   :  { %p1169_p3 = scmp.ne.s32.totalorder %s1455_s10, %s1168_s0  ;;  %p1172_p4 = scmp.lt.u32.totalorder %s1168_s0, %s1455_s10 }
 0x5d2   :  { %p1174_p5 = pnand %p1172_p4, %p1169_p3 }
 0x5d4   :  { %1177 = shalt.err (!%p1174_p5)
}
 0x5d5   :  { %770 = dma.vmem_to_hbm [thread:$0]  %s768_s1, 16, %s1455_s10, [#allocation4]  }
 0x5d6   :  { %1184 = dma.done.wait [#allocation4], 16  }
 0x5d7   :  { %1185 = vsyncadd [#allocation4], 4294967280 }
 0x5d8   :  { %774 = vsyncpa [#allocation3], 1 }
 0x5d9   :  { %775 = vsyncpa [#allocation6], 1 }
 0x5da   :  { %776 = vsyncpa [#allocation9], 1 }
 0x5db   :  { %777 = vsyncpa [#allocation4], 1 }

</bundles_post_ra>
